<compile_context>
chip_gen: v7x
topology: tpu7x:2x2x1
jax: 0.10.0
libtpu: 0.0.40
codegen_flags: <defaults>
</compile_context>

<pallas_src>
import jax
import jax.numpy as jnp
from jax.experimental import pallas as pl
from jax.experimental.pallas import tpu as pltpu

IN_FEATURES = 3 * 23      # 69
LANE_TILE = 128           # batch tile (lane dimension) for the batched kernel


# --------------------- single evaluation (module semantics) ---------------------

def _energy_kernel(x_ref, w_ref, b_ref, o_ref):
    # x_ref, w_ref: (1, IN_FEATURES) f32 in VMEM; b_ref: (1,) f32 in SMEM;
    # o_ref: (1, 1) f32 in VMEM.
    prod = x_ref[...] * w_ref[...]                                  # VPU mul, sublane 0
    o_ref[...] = jnp.sum(prod, axis=-1, keepdims=True) + b_ref[0]   # XLU lane reduce + scalar bias


# ------------------------- batched evaluation (amortized) -----------------------

def _energy_batch_kernel(xt_ref, w_ref, b_ref, o_ref):
    # xt_ref: (IN_FEATURES, TB) — one position set per lane (column).
    # w_ref:  (IN_FEATURES, 1)  — resident weight column (lane-broadcast).
    # b_ref:  (1,) f32 in SMEM  — scalar bias.
    # o_ref:  (1, TB)           — lane-dense output tile (unmasked store).
    prod = xt_ref[...] * w_ref[...]                                 # VPU, (69, TB)
    o_ref[...] = jnp.sum(prod, axis=0, keepdims=True) + b_ref[0]    # XLU sublane reduce


# --------------------------------- wrappers -------------------------------------

def prepare_params(weight, bias):
    """One-time parameter prep, hoisted out of the per-call jit path."""
    w_row = jnp.asarray(weight, jnp.float32).reshape(1, IN_FEATURES)
    b = jnp.asarray(bias, jnp.float32).reshape(1)
    return w_row, b


@jax.jit
def double_model_forward(positions, w_row, b):
    """DoubleModel.forward: positions (any shape with 69 elements) -> (1,) energy."""
    x = positions.reshape(1, IN_FEATURES).astype(jnp.float32)       # row-major flatten, per-call cast only
    out = pl.pallas_call(
        _energy_kernel,
        out_shape=jax.ShapeDtypeStruct((1, 1), jnp.float32),
        in_specs=[
            pl.BlockSpec(memory_space=pltpu.VMEM),                  # positions, whole (1, 69) tile
            pl.BlockSpec(memory_space=pltpu.VMEM),                  # weight,    whole (1, 69) tile
            pl.BlockSpec(memory_space=pltpu.SMEM),                  # bias, scalar path
        ],
        out_specs=pl.BlockSpec(memory_space=pltpu.VMEM),
    )(x, w_row, b)
    return out.reshape(1)                                           # matches PyTorch: shape (1,)


@jax.jit
def double_model_forward_batched(positions_batch, w_row, b):
    """Many DoubleModel.forward evaluations in one launch.

    positions_batch: (B, ...) with 69 elements per row -> (B,) energies.
    """
    batch = positions_batch.shape[0]
    x = positions_batch.reshape(batch, IN_FEATURES).astype(jnp.float32)
    b_pad = pl.cdiv(batch, LANE_TILE) * LANE_TILE
    if b_pad != batch:
        x = jnp.pad(x, ((0, b_pad - batch), (0, 0)))
    xt = x.T                                     # (69, B_pad): layout plumbing for lane-dense output
    w_col = w_row.reshape(IN_FEATURES, 1)        # free reshape (same row-major bytes)

    out = pl.pallas_call(
        _energy_batch_kernel,
        out_shape=jax.ShapeDtypeStruct((1, b_pad), jnp.float32),
        grid=(b_pad // LANE_TILE,),
        in_specs=[
            pl.BlockSpec((IN_FEATURES, LANE_TILE), lambda i: (0, i)),   # batch tile
            pl.BlockSpec((IN_FEATURES, 1), lambda i: (0, 0)),           # resident weight column
            pl.BlockSpec(memory_space=pltpu.SMEM),                      # bias scalar
        ],
        out_specs=pl.BlockSpec((1, LANE_TILE), lambda i: (0, i)),       # lane-dense output tile
        compiler_params=pltpu.CompilerParams(
            dimension_semantics=("parallel",)),                         # independent batch tiles
    )(xt, w_col, b)
    return out[0, :batch]


if __name__ == "__main__":
    key = jax.random.PRNGKey(0)
    k_pos, k_batch, k_w, k_b = jax.random.split(key, 4)

    # Single forward: positions of shape (3, 23), as the PyTorch module implies.
    positions = jax.random.normal(k_pos, (3, 23), dtype=jnp.float32)

    # PyTorch-style Linear(69, 1) init: U(-1/sqrt(fan_in), 1/sqrt(fan_in)).
    bound = float(IN_FEATURES) ** -0.5
    weight = jax.random.uniform(k_w, (1, IN_FEATURES), jnp.float32, -bound, bound)
    bias = jax.random.uniform(k_b, (1,), jnp.float32, -bound, bound)
    w_row, b = prepare_params(weight, bias)      # one-time, outside the jit'd forward

    # --- single evaluation (module semantics) ---
    energy = jax.block_until_ready(double_model_forward(positions, w_row, b))
    ref = jnp.sum(positions.reshape(-1) * weight.reshape(-1)) + bias[0]
    assert energy.shape == (1,)
    assert jnp.allclose(energy[0], ref, rtol=1e-5, atol=1e-5)

    # --- batched evaluation (amortized launch cost, lane-dense output) ---
    B = 256
    positions_batch = jax.random.normal(k_batch, (B, 3, 23), dtype=jnp.float32)
    energies = jax.block_until_ready(
        double_model_forward_batched(positions_batch, w_row, b))
    ref_batch = jnp.sum(positions_batch.reshape(B, -1) * weight.reshape(1, -1),
                        axis=-1) + bias[0]
    assert energies.shape == (B,)
    assert jnp.allclose(energies, ref_batch, rtol=1e-5, atol=1e-4)

    print("KERNEL_OK")
</pallas_src>

<mosaic_0001>
module attributes {stable_mosaic.version = 11 : i64} {
  func.func @_energy_kernel(%arg0: memref<1x69xf32, #tpu.memory_space<vmem>>, %arg1: memref<1x69xf32, #tpu.memory_space<vmem>>, %arg2: memref<1xf32, #tpu.memory_space<smem>>, %arg3: memref<1x1xf32, #tpu.memory_space<vmem>>) attributes {dimension_semantics = [], scalar_prefetch = 0 : i64, scratch_operands = 0 : i64, tpu.core_type = #tpu.core_type<tc>} {
    %c0 = arith.constant 0 : index
    %c0_0 = arith.constant 0 : index
    %0 = vector.load %arg0[%c0, %c0_0] : memref<1x69xf32, #tpu.memory_space<vmem>>, vector<1x69xf32>
    %c0_1 = arith.constant 0 : index
    %c0_2 = arith.constant 0 : index
    %1 = vector.load %arg1[%c0_1, %c0_2] : memref<1x69xf32, #tpu.memory_space<vmem>>, vector<1x69xf32>
    %2 = arith.mulf %0, %1 : vector<1x69xf32>
    %cst = arith.constant dense<0.000000e+00> : vector<1xf32>
    %3 = vector.multi_reduction <add>, %2, %cst [1] : vector<1x69xf32> to vector<1xf32>
    %4 = vector.shape_cast %3 : vector<1xf32> to vector<1x1xf32>
    %c0_3 = arith.constant 0 : index
    %5 = memref.load %arg2[%c0_3] : memref<1xf32, #tpu.memory_space<smem>>
    %6 = vector.broadcast %5 : f32 to vector<1x1xf32>
    %7 = arith.addf %4, %6 : vector<1x1xf32>
    %c0_4 = arith.constant 0 : index
    %c0_5 = arith.constant 0 : index
    %8 = vector.load %arg3[%c0_4, %c0_5] : memref<1x1xf32, #tpu.memory_space<vmem>>, vector<1x1xf32>
    tpu.vector_store %arg3[%c0_4, %c0_5], %7 {strides = array<i32>} : memref<1x1xf32, #tpu.memory_space<vmem>>, vector<1x1xf32>,
    return
  }
}

</mosaic_0001>

<bundles_post_ra>
// kernel: double_model_forward.1
= control target key start
LH: loop header
LB: loop body
LE: loop exit
PB: predicated region body
PF: predicated region fallthrough
CT: control target
= control target key end

     0   :  { %vm19_vm0 = vcmask 557056   ;;  %s109_s0 = inlined_call_operand.vmem [shape: f32[1,69], index: 0, kind: input, shape index: {}]   ;;  %s110_s1 = inlined_call_operand.vmem [shape: f32[1,69], index: 1, kind: input, shape index: {}]   ;;  %s111_s2 = inlined_call_operand.<no memory space> [shape: f32[1], index: 2, kind: input, shape index: {}]   ;;  %s112_s3 = inlined_call_operand.hbm [shape: f32[1,1], index: 3, kind: output, shape index: {}]  }
   0x1   :  { %v16_v0 = vld [vmem:[%s109_s0] sm:$0x1] }
   0x2   :  { %v17_v1 = vld [vmem:[%s110_s1] sm:$0x1] }
   0x3   :  { %v18_v2 = vmul.f32 %v17_v1, %v16_v0 }
   0x4   :  { %9 = vsyncpa [#allocation4], 0  ;;  %v24_v4 = vstv %s111_s2  ;;  %s67_s18 = smov [#allocation3]   ;;  %vm26_vm1 = vcmask 0  }
   0x5   :  { %v20_v3 = vsel %vm19_vm0, %v18_v2, 0.0  ;;  %s34_s19 = sshll.u32 %s67_s18, 4  ;;  %s35_s19 = int_to_ptr.vmem [resolvable:$true] %s34_s19 }
   0x6   :  { %21 = vadd.xlane.f32.xlu0 %v20_v3  ;;  %s43_s0 = scalar_lea.vmem %s35_s19, 16  ;;  %s47_s20 = scalar_lea.vmem %s35_s19, 32 }
   0x7   :  { %p44_p0 = scmp.ne.s32.totalorder %s35_s19, %s43_s0  ;;  %p48_p1 = scmp.lt.s32.totalorder %s35_s19, %s35_s19 }
   0x8   :  { %p49_p2 = scmp.lt.s32.totalorder %s47_s20, %s43_s0 }
   0xa   :  { %p50_p3 = por %p49_p2, %p48_p1 }
   0xc   :  { %p51_p4 = pnand %p50_p3, %p44_p0 }
  0x93   :  { %v22_v5 = vpop.xlane.xlu0 %21 }
  0x94   :  { %v25_v6 = vadd.f32 %v24_v4, %v22_v5 }
  0x96   :  { %27 = vst.msk [vmem:[#allocation3] sm:$0x1] %vm26_vm1, %v25_v6 }
  0x97   :  { %54 = shalt.err (!%p51_p4)
}
  0x98   :  { %s55_s22 = scalar_lea.hbm %s112_s3, 16 }
  0x99   :  { %p56_p5 = scmp.ne.s32.totalorder %s112_s3, %s55_s22  ;;  %p59_p6 = scmp.lt.u32.totalorder %s55_s22, %s112_s3 }
  0x9b   :  { %p61_p7 = pnand %p59_p6, %p56_p5 }
  0x9d   :  { %64 = shalt.err (!%p61_p7)
}
  0x9e   :  { %37 = dma.vmem_to_hbm [thread:$0]  %s35_s19, 16, %s112_s3, [#allocation4]  }
  0x9f   :  { %65 = dma.done.wait [#allocation4], 16  }
  0xa0   :  { %66 = vsyncadd [#allocation4], 4294967280 }
  0xa1   :  { %41 = vsyncpa [#allocation4], 1 }

</bundles_post_ra>
